<compile_context>
chip_gen: v6e
topology: v6e:2x2x1
jax: 0.10.0
libtpu: 0.0.40
codegen_flags: <defaults>
</compile_context>

<pallas_src>
import math
from functools import partial

import jax
import jax.numpy as jnp
from jax.experimental import pallas as pl
from jax.experimental.pallas import tpu as pltpu


def _mha_kernel(x_ref, wqkv_ref, bqkv_ref, wp_ref, bp_ref, o_ref, acc_ref, *,
                n_head, head_size, seq_len, compute_dtype, approx_recip):
    H, D, T = n_head, head_size, seq_len
    C = H * D
    M = x_ref.shape[0]            # block_b * T (static)
    TB = M // T
    cd = compute_dtype

    # ---- fused QKV projection: one wide MXU matmul, f32 accumulation ----
    qkv = jnp.dot(x_ref[...], wqkv_ref[...],
                  preferred_element_type=jnp.float32) + bqkv_ref[...]   # (M, 3C)

    # Causal mask built once per block, broadcast over the batch dim.
    row = jax.lax.broadcasted_iota(jnp.int32, (T, T), 0)
    col = jax.lax.broadcasted_iota(jnp.int32, (T, T), 1)
    causal = (col <= row)[None, :, :]                                   # (1, T, T)

    for h in range(H):            # static unroll: H known at trace time
        qh = qkv[:, 0 * C + h * D: 0 * C + (h + 1) * D].reshape(TB, T, D)
        kh = qkv[:, 1 * C + h * D: 1 * C + (h + 1) * D].reshape(TB, T, D)
        vh = qkv[:, 2 * C + h * D: 2 * C + (h + 1) * D].reshape(TB, T, D)

        # Batched over TB, contracting D; no explicit k transpose.
        # Operands cast to compute_dtype; MXU accumulates in f32.
        scores = jnp.einsum('btd,bsd->bts', qh.astype(cd), kh.astype(cd),
                            preferred_element_type=jnp.float32)         # (TB,T,T)
        # 1/sqrt(D) is folded into Wq/bq in the wrapper.  Matches the
        # reference's scores*tril - 1e12*(1-tril) exactly.  Mask stays f32.
        scores = jnp.where(causal, scores, -1.0e12)

        # f32 softmax; divide -> reciprocal (EUP slot) + multiply.
        m = jnp.max(scores, axis=-1, keepdims=True)
        p = jnp.exp(scores - m)
        l = jnp.sum(p, axis=-1, keepdims=True)
        attn = p * pl.reciprocal(l, approx=approx_recip)

        ctx = jnp.einsum('bts,bsd->btd', attn.astype(cd), vh.astype(cd),
                         preferred_element_type=jnp.float32)            # (TB,T,D)

        # Head-concat folded into the output projection: accumulate
        # ctx_h @ Wp[h*D:(h+1)*D, :] into the f32 VMEM scratch (static ref slice).
        contrib = jnp.dot(ctx.reshape(M, D).astype(cd),
                          wp_ref[h * D:(h + 1) * D, :],
                          preferred_element_type=jnp.float32)            # (M, C)
        if h == 0:
            acc_ref[...] = contrib
        else:
            acc_ref[...] += contrib

    # Single lane-dense-as-possible store of the projected block.
    o_ref[...] = (acc_ref[...] + bp_ref[...]).astype(o_ref.dtype)


def _pick_block_b(B, T, cap):
    """Largest divisor of B <= cap with block_b*T a multiple of 8 (layout-safe)."""
    for d in range(max(1, min(B, cap)), 0, -1):
        if B % d == 0 and (d * T) % 8 == 0:
            return d
    return B   # single block over the full extent is always layout-legal


def multi_head_attention(x, wq, bq, wk, bk, wv, bv, wp, bp, *,
                         compute_dtype=jnp.float32, block_b=None,
                         target_m_rows=512):
    """x: [B, T, C] float32; returns [B, T, C] float32."""
    B, T, C = x.shape
    H, _, D = wq.shape
    assert H * D == C

    inv_sqrt_d = 1.0 / math.sqrt(D)

    # Pack per-head weights [H, C, D] -> [C, H*D] so column h*D+d matches the
    # torch.cat(head outputs, dim=-1) ordering; fuse q|k|v along the lane dim.
    # 1/sqrt(D) is constant-folded into the Q columns / bias at pack time.
    def pack_w(w, scale=1.0):
        return (jnp.transpose(w, (1, 0, 2)) * scale).reshape(C, H * D)

    def pack_b(b, scale=1.0):
        return (b * scale).reshape(1, H * D)

    wqkv = jnp.concatenate(
        [pack_w(wq, inv_sqrt_d), pack_w(wk), pack_w(wv)], axis=1)   # (C, 3C)
    bqkv = jnp.concatenate(
        [pack_b(bq, inv_sqrt_d), pack_b(bk), pack_b(bv)], axis=1)   # (1, 3C)

    # Matmul operands may be bf16 (MXU accumulates f32); biases/softmax stay f32.
    x2 = x.reshape(B * T, C).astype(compute_dtype)
    wqkv = wqkv.astype(compute_dtype)
    wp_c = wp.astype(compute_dtype)
    bqkv = bqkv.astype(jnp.float32)
    bp_c = bp.astype(jnp.float32)

    # Row-block size: aim for ~target_m_rows MXU M-rows per grid step, but keep
    # the grid >= 2 steps when B >= 2 so v7x's second TensorCore gets work.
    if block_b is None:
        cap = max(1, target_m_rows // T)
        if B >= 2:
            cap = min(cap, B // 2)
        block_b = _pick_block_b(B, T, cap)
    assert B % block_b == 0
    m_blk = block_b * T
    grid = (B // block_b,)

    approx_recip = jnp.dtype(compute_dtype) != jnp.dtype(jnp.float32)
    kernel = partial(_mha_kernel, n_head=H, head_size=D, seq_len=T,
                     compute_dtype=compute_dtype, approx_recip=approx_recip)

    # Advisory cost estimate for XLA's scheduler.
    flops = (2 * B * T * C * (3 * C)            # fused QKV projection
             + 2 * 2 * B * H * T * T * D        # QK^T and P@V
             + 2 * B * T * C * C)               # output projection
    transcendentals = B * H * T * T             # softmax exp
    itemsize = jnp.dtype(compute_dtype).itemsize
    bytes_accessed = (B * T * C * itemsize                       # x
                      + C * 3 * C * itemsize + 3 * C * 4         # Wqkv, bqkv
                      + C * C * itemsize + C * 4                 # Wp, bp
                      + B * T * C * 4)                           # out
    cost = pl.CostEstimate(flops=int(flops),
                           transcendentals=int(transcendentals),
                           bytes_accessed=int(bytes_accessed))

    # Explicit VMEM budget (double-buffered x/out blocks + weights + scratch);
    # only override the scoped default when we actually need more than 16 MiB
    # (v5e's default scoped limit; v7x physical VMEM is 64 MiB).
    vmem_bytes = (2 * m_blk * C * itemsize            # x block, double-buffered
                  + 2 * m_blk * C * 4                 # out block
                  + 2 * (C * 3 * C * itemsize + 3 * C * 4
                         + C * C * itemsize + C * 4)  # weights, double-buffered
                  + m_blk * C * 4                     # f32 scratch accumulator
                  + 2 * m_blk * 3 * C * 4)            # qkv + per-head temporaries
    vmem_limit = None
    if vmem_bytes > 16 * 1024 * 1024:
        vmem_limit = min(int(vmem_bytes * 1.5), 100 * 1024 * 1024)

    out2 = pl.pallas_call(
        kernel,
        out_shape=jax.ShapeDtypeStruct((B * T, C), jnp.float32),
        grid_spec=pltpu.PrefetchScalarGridSpec(
            num_scalar_prefetch=0,
            grid=grid,
            in_specs=[
                pl.BlockSpec((m_blk, C), lambda i: (i, 0)),      # x rows
                pl.BlockSpec((C, 3 * C), lambda i: (0, 0)),      # Wqkv
                pl.BlockSpec((1, 3 * C), lambda i: (0, 0)),      # bqkv
                pl.BlockSpec((C, C), lambda i: (0, 0)),          # Wp
                pl.BlockSpec((1, C), lambda i: (0, 0)),          # bp
            ],
            out_specs=pl.BlockSpec((m_blk, C), lambda i: (i, 0)),
            scratch_shapes=[pltpu.VMEM((m_blk, C), jnp.float32)],
        ),
        compiler_params=pltpu.CompilerParams(
            dimension_semantics=("parallel",),
            vmem_limit_bytes=vmem_limit),
        cost_estimate=cost,
    )(x2, wqkv, bqkv, wp_c, bp_c)

    return out2.reshape(B, T, C)


def reference_mha(x, wq, bq, wk, bk, wv, bv, wp, bp):
    """Pure-JAX reference mirroring the PyTorch forward (eval mode)."""
    B, T, C = x.shape
    H, _, D = wq.shape
    tril = jnp.tril(jnp.ones((T, T), jnp.float32))
    head_outs = []
    for h in range(H):
        q = x @ wq[h] + bq[h]
        k = x @ wk[h] + bk[h]
        v = x @ wv[h] + bv[h]
        scores = jnp.einsum('btd,bsd->bts', q, k) / math.sqrt(D)
        scores = scores * tril - 1.0e12 * (1.0 - tril)
        attn = jax.nn.softmax(scores, axis=-1)
        head_outs.append(jnp.einsum('bts,bsd->btd', attn, v))
    cat = jnp.concatenate(head_outs, axis=-1)
    return cat @ wp + bp


if __name__ == "__main__":
    # Small shapes consistent with the module: n_embd=32, n_head=4 -> head_size=8
    B, T, C, H = 2, 8, 32, 4
    D = C // H

    key = jax.random.PRNGKey(0)
    ks = jax.random.split(key, 9)
    scale = 0.1
    x = jax.random.normal(ks[0], (B, T, C), jnp.float32)
    wq = scale * jax.random.normal(ks[1], (H, C, D), jnp.float32)
    bq = scale * jax.random.normal(ks[2], (H, 1, D), jnp.float32)
    wk = scale * jax.random.normal(ks[3], (H, C, D), jnp.float32)
    bk = scale * jax.random.normal(ks[4], (H, 1, D), jnp.float32)
    wv = scale * jax.random.normal(ks[5], (H, C, D), jnp.float32)
    bv = scale * jax.random.normal(ks[6], (H, 1, D), jnp.float32)
    wp = scale * jax.random.normal(ks[7], (C, C), jnp.float32)
    bp = scale * jax.random.normal(ks[8], (1, C), jnp.float32)

    ref = reference_mha(x, wq, bq, wk, bk, wv, bv, wp, bp)

    # f32 compute path (strict check).
    out = multi_head_attention(x, wq, bq, wk, bk, wv, bv, wp, bp)
    out = jax.block_until_ready(out)
    assert out.shape == (B, T, C)
    assert jnp.allclose(out, ref, atol=1e-4, rtol=1e-4), "f32 mismatch vs reference"

    # bf16 MXU-operand path (v6e/v7x optimization); softmax/accumulation stay f32.
    out_bf16 = multi_head_attention(x, wq, bq, wk, bk, wv, bv, wp, bp,
                                    compute_dtype=jnp.bfloat16)
    out_bf16 = jax.block_until_ready(out_bf16)
    assert jnp.allclose(out_bf16, ref, atol=5e-2, rtol=5e-2), "bf16 mismatch vs reference"

    print("KERNEL_OK")
</pallas_src>

<mosaic_0001>
module attributes {stable_mosaic.version = 11 : i64} {
  func.func @_mha_kernel(%arg0: i32, %arg1: memref<8x32xf32, #tpu.memory_space<vmem>>, %arg2: memref<32x96xf32, #tpu.memory_space<vmem>>, %arg3: memref<1x96xf32, #tpu.memory_space<vmem>>, %arg4: memref<32x32xf32, #tpu.memory_space<vmem>>, %arg5: memref<1x32xf32, #tpu.memory_space<vmem>>, %arg6: memref<8x32xf32, #tpu.memory_space<vmem>>, %arg7: memref<8x32xf32, #tpu.memory_space<vmem>>) attributes {dimension_semantics = [#tpu.dimension_semantics<parallel>], iteration_bounds = array<i64: 2>, scalar_prefetch = 0 : i64, scratch_operands = 1 : i64, tpu.core_type = #tpu.core_type<tc>, window_params = [{transform_indices = @transform_0, window_bounds = array<i64: 8, 32>}, {pipeline_mode = #tpu.pipeline_mode<synchronous>, transform_indices = @transform_1, window_bounds = array<i64: 32, 96>}, {pipeline_mode = #tpu.pipeline_mode<synchronous>, transform_indices = @transform_2, window_bounds = array<i64: 1, 96>}, {pipeline_mode = #tpu.pipeline_mode<synchronous>, transform_indices = @transform_3, window_bounds = array<i64: 32, 32>}, {pipeline_mode = #tpu.pipeline_mode<synchronous>, transform_indices = @transform_4, window_bounds = array<i64: 1, 32>}, {transform_indices = @transform_5, window_bounds = array<i64: 8, 32>}]} {
    %c0 = arith.constant 0 : index
    %c0_0 = arith.constant 0 : index
    %0 = vector.load %arg1[%c0, %c0_0] : memref<8x32xf32, #tpu.memory_space<vmem>>, vector<8x32xf32>
    %c0_1 = arith.constant 0 : index
    %c0_2 = arith.constant 0 : index
    %1 = vector.load %arg2[%c0_1, %c0_2] : memref<32x96xf32, #tpu.memory_space<vmem>>, vector<32x96xf32>
    %cst = arith.constant dense<0.000000e+00> : vector<8x96xf32>
    %2 = tpu.matmul %0, %1, %cst {dimension_numbers = #tpu.dot_dimension_numbers<[1], [0], [0], [1], [0, 0, 1, 1], [], []>} : vector<8x32xf32>, vector<32x96xf32>, vector<8x96xf32> -> vector<8x96xf32>
    %c0_3 = arith.constant 0 : index
    %c0_4 = arith.constant 0 : index
    %3 = vector.load %arg3[%c0_3, %c0_4] : memref<1x96xf32, #tpu.memory_space<vmem>>, vector<1x96xf32>
    %4 = vector.broadcast %3 : vector<1x96xf32> to vector<8x96xf32>
    %5 = arith.addf %2, %4 : vector<8x96xf32>
    %6 = tpu.iota {dimensions = array<i32: 0>} : vector<8x8xi32>
    %7 = tpu.iota {dimensions = array<i32: 1>} : vector<8x8xi32>
    %8 = arith.cmpi sle, %7, %6 : vector<8x8xi32>
    %9 = vector.shape_cast %8 : vector<8x8xi1> to vector<1x8x8xi1>
    %10 = vector.extract_strided_slice %5 {offsets = [0, 0], sizes = [8, 8], strides = [1, 1]} : vector<8x96xf32> to vector<8x8xf32>
    %11 = vector.shape_cast %10 : vector<8x8xf32> to vector<1x8x8xf32>
    %12 = vector.extract_strided_slice %5 {offsets = [0, 32], sizes = [8, 8], strides = [1, 1]} : vector<8x96xf32> to vector<8x8xf32>
    %13 = vector.shape_cast %12 : vector<8x8xf32> to vector<1x8x8xf32>
    %14 = vector.extract_strided_slice %5 {offsets = [0, 64], sizes = [8, 8], strides = [1, 1]} : vector<8x96xf32> to vector<8x8xf32>
    %15 = vector.shape_cast %14 : vector<8x8xf32> to vector<1x8x8xf32>
    "tpu.trace_start"() <{level = 10 : i32, message = "btd,bsd->bts"}> : () -> ()
    %cst_5 = arith.constant dense<0.000000e+00> : vector<1x8x8xf32>
    %16 = tpu.matmul %11, %13, %cst_5 {dimension_numbers = #tpu.dot_dimension_numbers<[2], [2], [1], [1], [0, 0, 0, 1, 1, 1], [0], [0]>} : vector<1x8x8xf32>, vector<1x8x8xf32>, vector<1x8x8xf32> -> vector<1x8x8xf32>
    %cst_6 = arith.constant -9.99999995E+11 : f32
    "tpu.trace_stop"() : () -> ()
    %17 = vector.broadcast %cst_6 : f32 to vector<1x8x8xf32>
    %18 = arith.select %9, %16, %17 : vector<1x8x8xi1>, vector<1x8x8xf32>
    %cst_7 = arith.constant dense<0xFF800000> : vector<1x8xf32>
    %19 = vector.multi_reduction <maximumf>, %18, %cst_7 [2] : vector<1x8x8xf32> to vector<1x8xf32>
    %20 = vector.shape_cast %19 : vector<1x8xf32> to vector<1x8x1xf32>
    %21 = vector.broadcast %20 : vector<1x8x1xf32> to vector<1x8x8xf32>
    %22 = arith.subf %18, %21 : vector<1x8x8xf32>
    %23 = math.exp %22 : vector<1x8x8xf32>
    %cst_8 = arith.constant dense<0.000000e+00> : vector<1x8xf32>
    %24 = vector.multi_reduction <add>, %23, %cst_8 [2] : vector<1x8x8xf32> to vector<1x8xf32>
    %25 = vector.shape_cast %24 : vector<1x8xf32> to vector<1x8x1xf32>
    %26 = tpu.reciprocal %25 : vector<1x8x1xf32> -> vector<1x8x1xf32>
    %27 = vector.broadcast %26 : vector<1x8x1xf32> to vector<1x8x8xf32>
    %28 = arith.mulf %23, %27 : vector<1x8x8xf32>
    "tpu.trace_start"() <{level = 10 : i32, message = "bts,bsd->btd"}> : () -> ()
    %cst_9 = arith.constant dense<0.000000e+00> : vector<1x8x8xf32>
    %29 = tpu.matmul %28, %15, %cst_9 {dimension_numbers = #tpu.dot_dimension_numbers<[2], [1], [1], [2], [0, 0, 0, 1, 1, 2], [0], [0]>} : vector<1x8x8xf32>, vector<1x8x8xf32>, vector<1x8x8xf32> -> vector<1x8x8xf32>
    "tpu.trace_stop"() : () -> ()
    %30 = vector.shape_cast %29 : vector<1x8x8xf32> to vector<8x8xf32>
    %c0_10 = arith.constant 0 : index
    %c0_11 = arith.constant 0 : index
    %31 = vector.load %arg4[%c0_10, %c0_11] : memref<32x32xf32, #tpu.memory_space<vmem>>, vector<8x32xf32>
    %cst_12 = arith.constant dense<0.000000e+00> : vector<8x32xf32>
    %32 = tpu.matmul %30, %31, %cst_12 {dimension_numbers = #tpu.dot_dimension_numbers<[1], [0], [0], [1], [0, 0, 1, 1], [], []>} : vector<8x8xf32>, vector<8x32xf32>, vector<8x32xf32> -> vector<8x32xf32>
    %c0_13 = arith.constant 0 : index
    %c0_14 = arith.constant 0 : index
    %33 = vector.load %arg7[%c0_13, %c0_14] : memref<8x32xf32, #tpu.memory_space<vmem>>, vector<8x32xf32>
    tpu.vector_store %arg7[%c0_13, %c0_14], %32 {strides = array<i32>} : memref<8x32xf32, #tpu.memory_space<vmem>>, vector<8x32xf32>,
    %34 = vector.extract_strided_slice %5 {offsets = [0, 8], sizes = [8, 8], strides = [1, 1]} : vector<8x96xf32> to vector<8x8xf32>
    %35 = vector.shape_cast %34 : vector<8x8xf32> to vector<1x8x8xf32>
    %36 = vector.extract_strided_slice %5 {offsets = [0, 40], sizes = [8, 8], strides = [1, 1]} : vector<8x96xf32> to vector<8x8xf32>
    %37 = vector.shape_cast %36 : vector<8x8xf32> to vector<1x8x8xf32>
    %38 = vector.extract_strided_slice %5 {offsets = [0, 72], sizes = [8, 8], strides = [1, 1]} : vector<8x96xf32> to vector<8x8xf32>
    %39 = vector.shape_cast %38 : vector<8x8xf32> to vector<1x8x8xf32>
    "tpu.trace_start"() <{level = 10 : i32, message = "btd,bsd->bts"}> : () -> ()
    %cst_15 = arith.constant dense<0.000000e+00> : vector<1x8x8xf32>
    %40 = tpu.matmul %35, %37, %cst_15 {dimension_numbers = #tpu.dot_dimension_numbers<[2], [2], [1], [1], [0, 0, 0, 1, 1, 1], [0], [0]>} : vector<1x8x8xf32>, vector<1x8x8xf32>, vector<1x8x8xf32> -> vector<1x8x8xf32>
    %cst_16 = arith.constant -9.99999995E+11 : f32
    "tpu.trace_stop"() : () -> ()
    %41 = vector.broadcast %cst_16 : f32 to vector<1x8x8xf32>
    %42 = arith.select %9, %40, %41 : vector<1x8x8xi1>, vector<1x8x8xf32>
    %cst_17 = arith.constant dense<0xFF800000> : vector<1x8xf32>
    %43 = vector.multi_reduction <maximumf>, %42, %cst_17 [2] : vector<1x8x8xf32> to vector<1x8xf32>
    %44 = vector.shape_cast %43 : vector<1x8xf32> to vector<1x8x1xf32>
    %45 = vector.broadcast %44 : vector<1x8x1xf32> to vector<1x8x8xf32>
    %46 = arith.subf %42, %45 : vector<1x8x8xf32>
    %47 = math.exp %46 : vector<1x8x8xf32>
    %cst_18 = arith.constant dense<0.000000e+00> : vector<1x8xf32>
    %48 = vector.multi_reduction <add>, %47, %cst_18 [2] : vector<1x8x8xf32> to vector<1x8xf32>
    %49 = vector.shape_cast %48 : vector<1x8xf32> to vector<1x8x1xf32>
    %50 = tpu.reciprocal %49 : vector<1x8x1xf32> -> vector<1x8x1xf32>
    %51 = vector.broadcast %50 : vector<1x8x1xf32> to vector<1x8x8xf32>
    %52 = arith.mulf %47, %51 : vector<1x8x8xf32>
    "tpu.trace_start"() <{level = 10 : i32, message = "bts,bsd->btd"}> : () -> ()
    %cst_19 = arith.constant dense<0.000000e+00> : vector<1x8x8xf32>
    %53 = tpu.matmul %52, %39, %cst_19 {dimension_numbers = #tpu.dot_dimension_numbers<[2], [1], [1], [2], [0, 0, 0, 1, 1, 2], [0], [0]>} : vector<1x8x8xf32>, vector<1x8x8xf32>, vector<1x8x8xf32> -> vector<1x8x8xf32>
    "tpu.trace_stop"() : () -> ()
    %54 = vector.shape_cast %53 : vector<1x8x8xf32> to vector<8x8xf32>
    %c8 = arith.constant 8 : index
    %c0_20 = arith.constant 0 : index
    %55 = vector.load %arg4[%c8, %c0_20] : memref<32x32xf32, #tpu.memory_space<vmem>>, vector<8x32xf32>
    %cst_21 = arith.constant dense<0.000000e+00> : vector<8x32xf32>
    %56 = tpu.matmul %54, %55, %cst_21 {dimension_numbers = #tpu.dot_dimension_numbers<[1], [0], [0], [1], [0, 0, 1, 1], [], []>} : vector<8x8xf32>, vector<8x32xf32>, vector<8x32xf32> -> vector<8x32xf32>
    %c0_22 = arith.constant 0 : index
    %c0_23 = arith.constant 0 : index
    %57 = vector.load %arg7[%c0_22, %c0_23] : memref<8x32xf32, #tpu.memory_space<vmem>>, vector<8x32xf32>
    %58 = arith.addf %57, %56 : vector<8x32xf32>
    %c0_24 = arith.constant 0 : index
    %c0_25 = arith.constant 0 : index
    %59 = vector.load %arg7[%c0_24, %c0_25] : memref<8x32xf32, #tpu.memory_space<vmem>>, vector<8x32xf32>
    tpu.vector_store %arg7[%c0_24, %c0_25], %58 {strides = array<i32>} : memref<8x32xf32, #tpu.memory_space<vmem>>, vector<8x32xf32>,
    %60 = vector.extract_strided_slice %5 {offsets = [0, 16], sizes = [8, 8], strides = [1, 1]} : vector<8x96xf32> to vector<8x8xf32>
    %61 = vector.shape_cast %60 : vector<8x8xf32> to vector<1x8x8xf32>
    %62 = vector.extract_strided_slice %5 {offsets = [0, 48], sizes = [8, 8], strides = [1, 1]} : vector<8x96xf32> to vector<8x8xf32>
    %63 = vector.shape_cast %62 : vector<8x8xf32> to vector<1x8x8xf32>
    %64 = vector.extract_strided_slice %5 {offsets = [0, 80], sizes = [8, 8], strides = [1, 1]} : vector<8x96xf32> to vector<8x8xf32>
    %65 = vector.shape_cast %64 : vector<8x8xf32> to vector<1x8x8xf32>
    "tpu.trace_start"() <{level = 10 : i32, message = "btd,bsd->bts"}> : () -> ()
    %cst_26 = arith.constant dense<0.000000e+00> : vector<1x8x8xf32>
    %66 = tpu.matmul %61, %63, %cst_26 {dimension_numbers = #tpu.dot_dimension_numbers<[2], [2], [1], [1], [0, 0, 0, 1, 1, 1], [0], [0]>} : vector<1x8x8xf32>, vector<1x8x8xf32>, vector<1x8x8xf32> -> vector<1x8x8xf32>
    %cst_27 = arith.constant -9.99999995E+11 : f32
    "tpu.trace_stop"() : () -> ()
    %67 = vector.broadcast %cst_27 : f32 to vector<1x8x8xf32>
    %68 = arith.select %9, %66, %67 : vector<1x8x8xi1>, vector<1x8x8xf32>
    %cst_28 = arith.constant dense<0xFF800000> : vector<1x8xf32>
    %69 = vector.multi_reduction <maximumf>, %68, %cst_28 [2] : vector<1x8x8xf32> to vector<1x8xf32>
    %70 = vector.shape_cast %69 : vector<1x8xf32> to vector<1x8x1xf32>
    %71 = vector.broadcast %70 : vector<1x8x1xf32> to vector<1x8x8xf32>
    %72 = arith.subf %68, %71 : vector<1x8x8xf32>
    %73 = math.exp %72 : vector<1x8x8xf32>
    %cst_29 = arith.constant dense<0.000000e+00> : vector<1x8xf32>
    %74 = vector.multi_reduction <add>, %73, %cst_29 [2] : vector<1x8x8xf32> to vector<1x8xf32>
    %75 = vector.shape_cast %74 : vector<1x8xf32> to vector<1x8x1xf32>
    %76 = tpu.reciprocal %75 : vector<1x8x1xf32> -> vector<1x8x1xf32>
    %77 = vector.broadcast %76 : vector<1x8x1xf32> to vector<1x8x8xf32>
    %78 = arith.mulf %73, %77 : vector<1x8x8xf32>
    "tpu.trace_start"() <{level = 10 : i32, message = "bts,bsd->btd"}> : () -> ()
    %cst_30 = arith.constant dense<0.000000e+00> : vector<1x8x8xf32>
    %79 = tpu.matmul %78, %65, %cst_30 {dimension_numbers = #tpu.dot_dimension_numbers<[2], [1], [1], [2], [0, 0, 0, 1, 1, 2], [0], [0]>} : vector<1x8x8xf32>, vector<1x8x8xf32>, vector<1x8x8xf32> -> vector<1x8x8xf32>
    "tpu.trace_stop"() : () -> ()
    %80 = vector.shape_cast %79 : vector<1x8x8xf32> to vector<8x8xf32>
    %c16 = arith.constant 16 : index
    %c0_31 = arith.constant 0 : index
    %81 = vector.load %arg4[%c16, %c0_31] : memref<32x32xf32, #tpu.memory_space<vmem>>, vector<8x32xf32>
    %cst_32 = arith.constant dense<0.000000e+00> : vector<8x32xf32>
    %82 = tpu.matmul %80, %81, %cst_32 {dimension_numbers = #tpu.dot_dimension_numbers<[1], [0], [0], [1], [0, 0, 1, 1], [], []>} : vector<8x8xf32>, vector<8x32xf32>, vector<8x32xf32> -> vector<8x32xf32>
    %c0_33 = arith.constant 0 : index
    %c0_34 = arith.constant 0 : index
    %83 = vector.load %arg7[%c0_33, %c0_34] : memref<8x32xf32, #tpu.memory_space<vmem>>, vector<8x32xf32>
    %84 = arith.addf %83, %82 : vector<8x32xf32>
    %c0_35 = arith.constant 0 : index
    %c0_36 = arith.constant 0 : index
    %85 = vector.load %arg7[%c0_35, %c0_36] : memref<8x32xf32, #tpu.memory_space<vmem>>, vector<8x32xf32>
    tpu.vector_store %arg7[%c0_35, %c0_36], %84 {strides = array<i32>} : memref<8x32xf32, #tpu.memory_space<vmem>>, vector<8x32xf32>,
    %86 = vector.extract_strided_slice %5 {offsets = [0, 24], sizes = [8, 8], strides = [1, 1]} : vector<8x96xf32> to vector<8x8xf32>
    %87 = vector.shape_cast %86 : vector<8x8xf32> to vector<1x8x8xf32>
    %88 = vector.extract_strided_slice %5 {offsets = [0, 56], sizes = [8, 8], strides = [1, 1]} : vector<8x96xf32> to vector<8x8xf32>
    %89 = vector.shape_cast %88 : vector<8x8xf32> to vector<1x8x8xf32>
    %90 = vector.extract_strided_slice %5 {offsets = [0, 88], sizes = [8, 8], strides = [1, 1]} : vector<8x96xf32> to vector<8x8xf32>
    %91 = vector.shape_cast %90 : vector<8x8xf32> to vector<1x8x8xf32>
    "tpu.trace_start"() <{level = 10 : i32, message = "btd,bsd->bts"}> : () -> ()
    %cst_37 = arith.constant dense<0.000000e+00> : vector<1x8x8xf32>
    %92 = tpu.matmul %87, %89, %cst_37 {dimension_numbers = #tpu.dot_dimension_numbers<[2], [2], [1], [1], [0, 0, 0, 1, 1, 1], [0], [0]>} : vector<1x8x8xf32>, vector<1x8x8xf32>, vector<1x8x8xf32> -> vector<1x8x8xf32>
    %cst_38 = arith.constant -9.99999995E+11 : f32
    "tpu.trace_stop"() : () -> ()
    %93 = vector.broadcast %cst_38 : f32 to vector<1x8x8xf32>
    %94 = arith.select %9, %92, %93 : vector<1x8x8xi1>, vector<1x8x8xf32>
    %cst_39 = arith.constant dense<0xFF800000> : vector<1x8xf32>
    %95 = vector.multi_reduction <maximumf>, %94, %cst_39 [2] : vector<1x8x8xf32> to vector<1x8xf32>
    %96 = vector.shape_cast %95 : vector<1x8xf32> to vector<1x8x1xf32>
    %97 = vector.broadcast %96 : vector<1x8x1xf32> to vector<1x8x8xf32>
    %98 = arith.subf %94, %97 : vector<1x8x8xf32>
    %99 = math.exp %98 : vector<1x8x8xf32>
    %cst_40 = arith.constant dense<0.000000e+00> : vector<1x8xf32>
    %100 = vector.multi_reduction <add>, %99, %cst_40 [2] : vector<1x8x8xf32> to vector<1x8xf32>
    %101 = vector.shape_cast %100 : vector<1x8xf32> to vector<1x8x1xf32>
    %102 = tpu.reciprocal %101 : vector<1x8x1xf32> -> vector<1x8x1xf32>
    %103 = vector.broadcast %102 : vector<1x8x1xf32> to vector<1x8x8xf32>
    %104 = arith.mulf %99, %103 : vector<1x8x8xf32>
    "tpu.trace_start"() <{level = 10 : i32, message = "bts,bsd->btd"}> : () -> ()
    %cst_41 = arith.constant dense<0.000000e+00> : vector<1x8x8xf32>
    %105 = tpu.matmul %104, %91, %cst_41 {dimension_numbers = #tpu.dot_dimension_numbers<[2], [1], [1], [2], [0, 0, 0, 1, 1, 2], [0], [0]>} : vector<1x8x8xf32>, vector<1x8x8xf32>, vector<1x8x8xf32> -> vector<1x8x8xf32>
    "tpu.trace_stop"() : () -> ()
    %106 = vector.shape_cast %105 : vector<1x8x8xf32> to vector<8x8xf32>
    %c24 = arith.constant 24 : index
    %c0_42 = arith.constant 0 : index
    %107 = vector.load %arg4[%c24, %c0_42] : memref<32x32xf32, #tpu.memory_space<vmem>>, vector<8x32xf32>
    %cst_43 = arith.constant dense<0.000000e+00> : vector<8x32xf32>
    %108 = tpu.matmul %106, %107, %cst_43 {dimension_numbers = #tpu.dot_dimension_numbers<[1], [0], [0], [1], [0, 0, 1, 1], [], []>} : vector<8x8xf32>, vector<8x32xf32>, vector<8x32xf32> -> vector<8x32xf32>
    %c0_44 = arith.constant 0 : index
    %c0_45 = arith.constant 0 : index
    %109 = vector.load %arg7[%c0_44, %c0_45] : memref<8x32xf32, #tpu.memory_space<vmem>>, vector<8x32xf32>
    %110 = arith.addf %109, %108 : vector<8x32xf32>
    %c0_46 = arith.constant 0 : index
    %c0_47 = arith.constant 0 : index
    %111 = vector.load %arg7[%c0_46, %c0_47] : memref<8x32xf32, #tpu.memory_space<vmem>>, vector<8x32xf32>
    tpu.vector_store %arg7[%c0_46, %c0_47], %110 {strides = array<i32>} : memref<8x32xf32, #tpu.memory_space<vmem>>, vector<8x32xf32>,
    %c0_48 = arith.constant 0 : index
    %c0_49 = arith.constant 0 : index
    %112 = vector.load %arg7[%c0_48, %c0_49] : memref<8x32xf32, #tpu.memory_space<vmem>>, vector<8x32xf32>
    %c0_50 = arith.constant 0 : index
    %c0_51 = arith.constant 0 : index
    %113 = vector.load %arg5[%c0_50, %c0_51] : memref<1x32xf32, #tpu.memory_space<vmem>>, vector<1x32xf32>
    %114 = vector.broadcast %113 : vector<1x32xf32> to vector<8x32xf32>
    %115 = arith.addf %112, %114 : vector<8x32xf32>
    %c0_52 = arith.constant 0 : index
    %c0_53 = arith.constant 0 : index
    %116 = vector.load %arg6[%c0_52, %c0_53] : memref<8x32xf32, #tpu.memory_space<vmem>>, vector<8x32xf32>
    tpu.vector_store %arg6[%c0_52, %c0_53], %115 {strides = array<i32>} : memref<8x32xf32, #tpu.memory_space<vmem>>, vector<8x32xf32>,
    return
  }
  func.func @transform_0(%arg0: i32) -> (i32, i32) {
    %c0_i32 = arith.constant 0 : i32
    %c0_i32_0 = arith.constant 0 : i32
    return %arg0, %c0_i32 : i32, i32
  }
  func.func @transform_1(%arg0: i32) -> (i32, i32) {
    %c0_i32 = arith.constant 0 : i32
    %c0_i32_0 = arith.constant 0 : i32
    %c0_i32_1 = arith.constant 0 : i32
    return %c0_i32, %c0_i32_0 : i32, i32
  }
  func.func @transform_2(%arg0: i32) -> (i32, i32) {
    %c0_i32 = arith.constant 0 : i32
    %c0_i32_0 = arith.constant 0 : i32
    %c0_i32_1 = arith.constant 0 : i32
    return %c0_i32, %c0_i32_0 : i32, i32
  }
  func.func @transform_3(%arg0: i32) -> (i32, i32) {
    %c0_i32 = arith.constant 0 : i32
    %c0_i32_0 = arith.constant 0 : i32
    %c0_i32_1 = arith.constant 0 : i32
    return %c0_i32, %c0_i32_0 : i32, i32
  }
  func.func @transform_4(%arg0: i32) -> (i32, i32) {
    %c0_i32 = arith.constant 0 : i32
    %c0_i32_0 = arith.constant 0 : i32
    %c0_i32_1 = arith.constant 0 : i32
    return %c0_i32, %c0_i32_0 : i32, i32
  }
  func.func @transform_5(%arg0: i32) -> (i32, i32) {
    %c0_i32 = arith.constant 0 : i32
    %c0_i32_0 = arith.constant 0 : i32
    return %arg0, %c0_i32 : i32, i32
  }
}

</mosaic_0001>

<bundles_post_ra>
// kernel: tpu_custom_call.1
= control target key start
LH: loop header
LB: loop body
LE: loop exit
PB: predicated region body
PF: predicated region fallthrough
CT: control target
= control target key end

     0   :  { %10 = vsyncpa [#allocation4], 0  ;;  %s2154_s0 = inlined_call_operand.hbm [shape: f32[16,32], index: 0, kind: input, shape index: {}]   ;;  %s2155_s1 = inlined_call_operand.hbm [shape: f32[32,96], index: 1, kind: input, shape index: {}]   ;;  %s2156_s2 = inlined_call_operand.vmem [shape: f32[1,96], index: 2, kind: input, shape index: {}]   ;;  %s2157_s3 = inlined_call_operand.hbm [shape: f32[32,32], index: 3, kind: input, shape index: {}]   ;;  %s2158_s4 = inlined_call_operand.vmem [shape: f32[1,32], index: 4, kind: input, shape index: {}]   ;;  %s2159_s5 = inlined_call_operand.hbm [shape: f32[16,32], index: 5, kind: output, shape index: {}]  }
   0x1   :  { %12 = vsyncpa [#allocation4 + $0x1], 0 }
   0x2   :  { %13 = vsyncpa [#allocation7], 0 }
   0x3   :  { %14 = vsyncpa [#allocation5], 0 }
   0x4   :  { %16 = vsyncpa [#allocation5 + $0x1], 0  ;;  %s1875_s18 = smov 0   ;;  %s1877_s19 = smov 0  }
   0x5   :  { %s1879_s20 = smov 0   ;;  %s1881_s21 = smov 0  }
   0x6 LB: > { %s1896_s22 = sadd.s32 4294967295, %s1824_s21   ;;  %s1443_s23 = sadd.s32 4294967294, %s1824_s21   ;;  %s1824_s21 = sphi %s1881_s21, %s2181_s21   ;;  %s1820_s20 = sphi %s1879_s20, %s2180_s20   ;;  %s1816_s19 = sphi %s1877_s19, %s2179_s19   ;;  %s1812_s18 = sphi %s1875_s18, %s2178_s18  }
   0x7   : > { %p42_p0 = scmp.ne.s32.totalorder %s1816_s19, %s1812_s18  ;;  %p2160_p1 = scmp.eq.s32.totalorder %s1896_s22, 0 }
   0x8   : > { %p156_p3 = scmp.eq.s32.totalorder %s1443_s23, 1  ;;  %p1444_p5 = scmp.ge.s32.totalorder %s1824_s21, 1 }
   0x9   : > { %p1905_p4 = por %p2160_p1, %p42_p0  ;;  %p163_p7 = scmp.lt.s32.totalorder %s1824_s21, 3 }
   0xa   : > { %p1910_p6 = por %p156_p3, %p42_p0  ;;  %s1826_s27 = smov [#allocation6]  }
   0xb   : > { %s2164_s24 = scalar_select %p1905_p4, 1, 0 }
   0xc   : > { %s2165_s25 = scalar_select %p1910_p6, 1, 0 }
   0xd   : > { %p1915_p8 = pnand %p1444_p5, %p163_p7  ;;  %s175_s28 = sshll.u32 %s1826_s27, 4  ;;  %s176_s28 = int_to_ptr.vmem [resolvable:$true] %s175_s28 }
   0xe   : > { %s1827_s30 = smov [#allocation8]   ;;  %s1687_s7 = scalar_lea.vmem %s176_s28, 512 }
   0xf   : > { %s2166_s26 = scalar_select %p1915_p8, 1, 0 }
  0x10   : > { %p1590_p9 = pneg %p1915_p8  ;;  %s191_s6 = sshll.u32 %s1827_s30, 4  ;;  %s192_s6 = int_to_ptr.vmem [resolvable:$true] %s191_s6 }
  0x11   : > { %p1688_p13 = scmp.ne.s32.totalorder %s176_s28, %s1687_s7  ;;  %p1695_p5 = scmp.lt.s32.totalorder %s176_s28, %s176_s28 }
  0x12   : > { %p1924_p11 = pnand %p1590_p9, %p2160_p1  ;;  %p1696_p7 = scmp.lt.s32.totalorder %s1687_s7, %s1687_s7 }
  0x14   : > { %p1678_p12 = pneg %p1924_p11  ;;  %p1697_p10 = por %p1696_p7, %p1695_p5 }
  0x16   : > { %p1690_p0 = pnand %p1688_p13, %p1678_p12 }
  0x18   : > { %p1691_p3 = pneg %p1690_p0 }
  0x1a   : > { %p1698_p9 = pnand %p1697_p10, %p1691_p3 }
  0x1c   : > { %1701 = shalt.err (!%p1698_p9)
}
  0x1d   : > { %s1828_s8 = smov 128   ;;  %s1829_s9 = smov 8  }
  0x1e   : > { %1593 = dma.hbm_to_vmem [thread:$0]  (!%p1924_p11), %s2155_s1, 512, %s176_s28, [#allocation7], %s1828_s8, %s1828_s8, %s1829_s9  }
  0x1f   : > { %s1713_s12 = scalar_lea.vmem %s192_s6, 512  ;;  %p1721_p2 = scmp.lt.s32.totalorder %s192_s6, %s192_s6 }
  0x20   : > { %p1714_p1 = scmp.ne.s32.totalorder %s192_s6, %s1713_s12  ;;  %p1722_p6 = scmp.lt.s32.totalorder %s1713_s12, %s1713_s12 }
  0x22   : > { %p1716_p13 = pnand %p1714_p1, %p1678_p12  ;;  %p1723_p5 = por %p1722_p6, %p1721_p2 }
  0x24   : > { %p1717_p0 = pneg %p1716_p13 }
  0x26   : > { %p1724_p10 = pnand %p1723_p5, %p1717_p0 }
  0x28   : > { %1727 = shalt.err (!%p1724_p10)
}
  0x29   : > { %1596 = dma.hbm_to_vmem [thread:$0]  (!%p1924_p11), %s2157_s3, 512, %s192_s6, [#allocation7], %s1828_s8, %s1828_s8, %s1829_s9  }
  0x2a   : > { %s1947_s15 = sadd.s32 1, %s1824_s21   ;;  %s29_s16 = sadd.s32 1, %s1820_s20 }
  0x2b   : > { %s26_s17 = ssub.s32 %s1824_s21, %s1947_s15  ;;  %p36_p1 = scmp.ne.s32.totalorder %s1820_s20, %s1816_s19 }
  0x2c   : > { %p27_p2 = scmp.eq.s32.totalorder %s26_s17, 0  ;;  %p37_p6 = scmp.eq.s32.totalorder %s1824_s21, 0 }
  0x2d   : > { %p2168_p12 = scmp.eq.s32.totalorder %s1896_s22, 1  ;;  %p1607_p7 = scmp.lt.s32.totalorder %s1824_s21, 2 }
  0x2e   : > { %s1963_s27 = scalar_select %p27_p2, %s1820_s20, %s29_s16  }
  0x2f   : > { %p1957_p3 = por %p2168_p12, %p36_p1  ;;  %p38_p9 = por %p37_p6, %p36_p1 }
  0x30   : > { %s208_s28 = sand.u32 1, %s1820_s20   ;;  %s1449_s30 = sshll.u32 %s1824_s21, 7 }
  0x31   : > { %s2169_s23 = scalar_select %p1957_p3, 1, 0 }
  0x32   : > { %s1448_s29 = sshll.u32 %s208_s28, 3  ;;  %s1970_s8 = scalar_lea.hbm %s2154_s0, %s1449_s30 }
  0x33   : > { %s212_s9 = scalar_lea.vmem [#allocation3], %s1448_s29  ;;  %p1972_p11 = pnand %p1607_p7, %p38_p9 }
  0x34   : > { %s219_s10 = sshll.u32 %s212_s9, 4  ;;  %s209_s12 = scalar_lea.sflag [#allocation4], %s208_s28  ;;  %s220_s10 = int_to_ptr.vmem [resolvable:$true] %s219_s10 }
  0x35   : > { %s1728_s13 = scalar_lea.hbm %s1970_s8, 128  ;;  %p1730_p0 = pneg %p1972_p11 }
  0x36   : > { %p1729_p13 = scmp.ne.s32.totalorder %s1970_s8, %s1728_s13  ;;  %s1733_s17 = scalar_lea.hbm %s2154_s0, 256 }
  0x37   : > { %p1734_p1 = scmp.lt.s32.totalorder %s1970_s8, %s2154_s0  ;;  %p1735_p2 = scmp.lt.s32.totalorder %s1733_s17, %s1728_s13 }
  0x38   : > { %p1731_p5 = pnand %p1730_p0, %p1729_p13 }
  0x39   : > { %p1736_p6 = por %p1735_p2, %p1734_p1 }
  0x3a   : > { %p1732_p10 = pneg %p1731_p5 }
  0x3c   : > { %p1737_p12 = pnand %p1736_p6, %p1732_p10 }
  0x3e   : > { %1740 = shalt.err (!%p1737_p12)
}
  0x3f   : > { %s1741_s6 = scalar_lea.vmem %s220_s10, 128  ;;  %s1830_s28 = smov [#allocation3]  }
  0x40   : > { %p1742_p7 = scmp.ne.s32.totalorder %s220_s10, %s1741_s6  ;;  %s1746_s7 = sshll.u32 %s1830_s28, 4  ;;  %s1747_s7 = int_to_ptr.vmem [resolvable:$false] %s1746_s7 }
  0x41   : > { %s1748_s9 = scalar_lea.vmem %s1747_s7, 256  ;;  %p1749_p13 = scmp.lt.s32.totalorder %s220_s10, %s1747_s7 }
  0x42   : > { %p1744_p9 = pnand %p1742_p7, %p1730_p0  ;;  %p1750_p5 = scmp.lt.s32.totalorder %s1748_s9, %s1741_s6 }
  0x44   : > { %p1745_p3 = pneg %p1744_p9  ;;  %p1751_p4 = por %p1750_p5, %p1749_p13 }
  0x46   : > { %p1752_p8 = pnand %p1751_p4, %p1745_p3 }
  0x48   : > { %1755 = shalt.err (!%p1752_p8)
}
  0x49   : > { %1600 = dma.hbm_to_vmem [thread:$0]  (!%p1972_p11), %s1970_s8, 128, %s220_s10, %s209_s12  }
  0x4a   : > { %p2171_p10 = scmp.ne.s32.totalorder %s2166_s26, 0 }
  0x4b   : > { %s1993_s13 = sand.u32 (!%p2171_p10), 1, %s1816_s19   ;;  %p2172_p4 = scmp.ne.s32.totalorder (!%p2171_p10), %s2164_s24, 0 }
  0x4c   : > { %228 = sbr.rel (%p2171_p10) target bundleno = 2855 (0xb27), region = 40  ;;  %s1451_s14 = sshll.u32 (!%p2171_p10), %s1993_s13, 3 }
  0x4d   : > { %s231_s16 = scalar_lea.sflag (!%p2171_p10), [#allocation4], %s1993_s13  ;;  %s234_s17 = scalar_lea.vmem (!%p2171_p10), [#allocation3], %s1451_s14 }
  0x51   : > { %1799 = dma.done.wait (%p2172_p4), %s231_s16, 128  }
  0x52   : > { %1801 = vsyncadd (%p2172_p4), %s231_s16, 4294967168  ;;  %p2173_p8 = scmp.eq.s32.totalorder %s1896_s22, 0 }
  0x54   : > { %1803 = dma.done.wait (%p2173_p8), [#allocation7], 1024   ;;  %p2174_p3 = pmov %p2173_p8 }
  0x55   : > { %v1831_v0 = vmov 0.0   ;;  %vm1832_vm0 = vmmov 0   ;;  %v273_v1 = vld [vmem:[#allocation6 + $0x18] sm:$0xff]  ;;  %v272_v2 = vld [vmem:[#allocation6 + $0x10] sm:$0xff]  ;;  %v271_v3 = vld [vmem:[#allocation6 + $0x8] sm:$0xff]  ;;  %vm281_vm1 = vcmask 261120   ;;  %v355_v12 = vlaneseq }
  0x56   : > { %1805 = vsyncadd (%p2174_p3), [#allocation7], 4294966272  ;;  %1507 = vmatprep.subr.mxu0 %v1831_v0  ;;  %1515 = vmatprep.mubr.msk.f32.mxu0 %vm1832_vm0, %v1831_v0  ;;  %v270_v4 = vld [vmem:[#allocation6] sm:$0xff]  ;;  %v269_v5 = vld [vmem:[%s234_s17] sm:$0xff]  ;;  %s1833_s8 = smov 64   ;;  %s1834_s10 = smov 96  }
  0x57   : > { %1518 = vmatprep.subr.mxu1 %v1831_v0  ;;  %1520 = vmatprep.mubr.msk.f32.mxu1 %vm1832_vm0, %v1831_v0  ;;  %v1455_v6 = vld [vmem:[%s2156_s2] ss:$0 sm:$0xff]  ;;  %s1835_s11 = smov 88   ;;  %vm363_vm2 = vcmask 64512   ;;  %v2035_v13 = vshrl.u32 %v355_v12, 7  ;;  %v2037_v14 = vand.u32 127, %v355_v12 }
  0x58   : > { %1508 = vmatpush3.msra.mxu0 %v273_v1  ;;  %s1836_s12 = smov 56   ;;  %s1837_s30 = smov 120   ;;  %v526_v24 = vld [vmem:[#allocation8] sm:$0xff]  ;;  %v767_v49 = vld [vmem:[#allocation8 + $0x8] sm:$0xff] }
  0x59   : > { %1509 = vmatprep.subr.mxu0 %v1831_v0  ;;  %vm359_vm3 = vcmp.le.s32.totalorder %v2037_v14, %v2035_v13  ;;  %s1838_s29 = smov 80   ;;  %s1839_s6 = smov 112  }
  0x5a   : > { %1510 = vmatpush3.msra.mxu0 %v272_v2  ;;  %s1840_s28 = smov 48   ;;  %s1841_s7 = smov 72  }
  0x5b   : > { %1511 = vmatprep.subr.mxu0 %v1831_v0  ;;  %s1842_s9 = smov 104   ;;  %s1843_s16 = smov 40  }
  0x5c   : > { %1512 = vmatpush3.msra.mxu0 %v271_v3  ;;  %s1475_s26 = sshll.u32 %s1896_s22, 7  ;;  %p2175_p0 = scmp.ne.s32.totalorder %s2169_s23, 0 }
  0x5d   : > { %1513 = vmatprep.subr.mxu0 %v1831_v0 }
  0x5e   : > { %1514 = vmatpush3.msra.mxu0 %v270_v4 }
  0x5f   : > { %1516 = vmatmul.mubr.msk.f32.vlgmr.msra.gmra.mxu0 %vm281_vm1, %v269_v5  ;;  %1528 = vmatprep.subr.mxu0 %v1831_v0 }
  0x60   : > { %1530 = vmatprep.mubr.msk.f32.mxu0 %vm1832_vm0, %v1831_v0  ;;  %1529 = vmatpush3.msra.mxu0 %v526_v24 }
  0x61   : > { %1538 = vmatprep.subr.mxu0 %v1831_v0 }
 0x11f   : > { %v351_v7 = vpop.f32.mrf.mxu0 }
 0x120   : > { %v2023_v8 = vadd.f32 %v1455_v6, %v351_v7 }
 0x121   : > { %v1517_v9 = vpop.f32.mrf.mxu0 }
 0x122   : > { %450 = vrot.lane.b32.xlu1 %v2023_v8, %s1833_s8  ;;  %361 = vrot.lane.b32.xlu0 %v2023_v8, %s1834_s10  ;;  %v1010_v9 = vld [vmem:[#allocation8 + $0x10] sm:$0xff]  ;;  %s268_s8 = scalar_lea.vmem [#allocation9], %s1451_s14 }
 0x123   : > { %s1354_s10 = sshll.u32 %s268_s8, 4  ;;  %s1355_s10 = int_to_ptr.vmem [resolvable:$true] %s1354_s10 }
 0x126   : > { %603 = vrot.lane.b32.xlu1 %v2023_v8, %s1835_s11 }
 0x194   : > { %v362_v10 = vpop.permute.xlu0 %361  ;;  %v451_v11 = vpop.permute.xlu1 %450 }
 0x195   : > { %1519 = vmatpush3.xpose.msk.msra.mxu1 %vm363_vm2, %v362_v10 }
 0x196   : > { %1523 = vmatprep.subr.mxu1 %v1831_v0 }
 0x198   : > { %1521 = vmatmul.mubr.msk.f32.vlgmr.msra.gmra.mxu1 %vm363_vm2, %v2023_v8  ;;  %v604_v25 = vpop.permute.xlu1 %603 }
 0x199   : > { %1524 = vmatpush3.msra.mxu1 %v451_v11  ;;  %1525 = vmatprep.mubr.msk.f32.mxu1 %vm1832_vm0, %v1831_v0 }
 0x19a   : > { %1533 = vmatprep.subr.mxu1 %v1831_v0 }
 0x258   : > { %v434_v15 = vpop.f32.mrf.mxu1 }
 0x259   : > { %v438_v16 = vsel %vm359_vm3, %v434_v15, -1e+12 }
 0x25a   : > { %v1522_v17 = vpop.f32.mrf.mxu1  ;;  %v439_v18 = vsel %vm363_vm2, %v438_v16, -inf }
 0x25b   : > { %440 = vmax.xlane.f32.xlu0 %v439_v18 }
 0x271   : > { %691 = vrot.lane.b32.xlu0 %v2023_v8, %s1836_s12 }
 0x2e4   : > { %v441_v19 = vpop.xlane.xlu0 %440 }
 0x2e5   : > { %v442_v20 = vsub.f32 %v438_v16, %v441_v19 }
 0x2e7   : > { %v443_v21 = vmul.f32 1.442695, %v442_v20 }
 0x2e8   : > { %v692_v31 = vpop.permute.xlu0 %691 }
 0x2e9   : > { %1660 = vpow2.f32 %v443_v21 }
 0x2f6   : > { %v1661_v22 = vpop.eup %1660 }
 0x2f7   : > { %v445_v23 = vsel %vm363_vm2, %v1661_v22, 0.0 }
 0x2f8   : > { %446 = vadd.xlane.f32.xlu1 %v445_v23 }
 0x309   : > { %601 = vrot.lane.b32.xlu1 %v2023_v8, %s1837_s30  ;;  %s1352_s30 = scalar_lea.hbm %s2159_s5, %s1475_s26 }
 0x381   : > { %v447_v26 = vpop.xlane.xlu1 %446 }
 0x382   : > { %1662 = vrcp.f32 %v447_v26 }
 0x385   : > { %v602_v29 = vpop.permute.xlu1 %601 }
 0x38f   : > { %v1663_v27 = vpop.eup %1662 }
 0x390   : > { %v449_v28 = vmul.f32 %v1663_v27, %v1661_v22 }
 0x392   : > { %1526 = vmatmul.mubr.msk.f32.vlgmr.msra.gmra.mxu1 %vm363_vm2, %v449_v28 }
 0x393   : > { %1534 = vmatpush3.xpose.msk.msra.mxu1 %vm363_vm2, %v604_v25  ;;  %1535 = vmatprep.mubr.msk.f32.mxu1 %vm1832_vm0, %v1831_v0 }
 0x394   : > { %1543 = vmatprep.subr.mxu1 %v1831_v0 }
 0x396   : > { %1536 = vmatmul.mubr.msk.f32.vlgmr.msra.gmra.mxu1 %vm363_vm2, %v602_v29 }
 0x397   : > { %1545 = vmatprep.mubr.msk.f32.mxu1 %vm1832_vm0, %v1831_v0  ;;  %1544 = vmatpush3.msra.mxu1 %v767_v49 }
 0x398   : > { %1553 = vmatprep.subr.mxu1 %v1831_v0 }
 0x452   : > { %v522_v30 = vpop.f32.mrf.mxu1 }
 0x453   : > { %1531 = vmatmul.mubr.msk.f32.vlgmr.msra.gmra.mxu0 %vm363_vm2, %v522_v30 }
 0x454   : > { %1539 = vmatpush3.msra.mxu0 %v692_v31  ;;  %v1527_v32 = vpop.f32.mrf.mxu1  ;;  %1540 = vmatprep.mubr.msk.f32.mxu0 %vm1832_vm0, %v1831_v0 }
 0x455   : > { %1548 = vmatprep.subr.mxu0 %v1831_v0 }
 0x456   : > { %v675_v33 = vpop.f32.mrf.mxu1 }
 0x457   : > { %v679_v34 = vsel %vm359_vm3, %v675_v33, -1e+12 }
 0x458   : > { %v1537_v35 = vpop.f32.mrf.mxu1  ;;  %v680_v36 = vsel %vm363_vm2, %v679_v34, -inf }
 0x459   : > { %681 = vmax.xlane.f32.xlu1 %v680_v36 }
 0x4e2   : > { %v682_v37 = vpop.xlane.xlu1 %681 }
 0x4e3   : > { %v683_v38 = vsub.f32 %v679_v34, %v682_v37  ;;  %v1473_v34 = vld [vmem:[%s2158_s4] ss:$0 sm:$0xff] }
 0x4e5   : > { %v684_v39 = vmul.f32 1.442695, %v683_v38 }
 0x4e7   : > { %1664 = vpow2.f32 %v684_v39 }
 0x4f4   : > { %v1665_v40 = vpop.eup %1664 }
 0x4f5   : > { %v686_v41 = vsel %vm363_vm2, %v1665_v40, 0.0 }
 0x4f6   : > { %687 = vadd.xlane.f32.xlu0 %v686_v41 }
 0x50c   : > { %846 = vrot.lane.b32.xlu0 %v2023_v8, %s1838_s29  ;;  %s1341_s29 = scalar_lea.sflag [#allocation5], %s1993_s13 }
 0x510   : > { %844 = vrot.lane.b32.xlu0 %v2023_v8, %s1839_s6  ;;  %s1756_s6 = scalar_lea.vmem %s1355_s10, 128 }
 0x511   : > { %p1757_p11 = scmp.ne.s32.totalorder %s1355_s10, %s1756_s6 }
 0x513   : > { %v596_v42 = vpop.f32.mrf.mxu0  ;;  %p1758_p1 = pnand %p1757_p11, %p2175_p0 }
 0x514   : > { %600 = vst.msk [vmem:[#allocation2] sm:$0xff] %vm281_vm1, %v596_v42 }
 0x515   : > { %v1532_v43 = vpop.f32.mrf.mxu0  ;;  %p1759_p2 = pneg %p1758_p1 }
 0x51b   : > { %v841_v63 = vld [vmem:[#allocation2] sm:$0xff] }
 0x57f   : > { %v688_v44 = vpop.xlane.xlu0 %687 }
 0x580   : > { %1666 = vrcp.f32 %v688_v44 }
 0x583   : > { %v847_v46 = vpop.permute.xlu0 %846 }
 0x587   : > { %v845_v48 = vpop.permute.xlu0 %844 }
 0x58d   : > { %v1667_v45 = vpop.eup %1666 }
 0x58e   : > { %v690_v47 = vmul.f32 %v1667_v45, %v1665_v40 }
 0x590   : > { %1541 = vmatmul.mubr.msk.f32.vlgmr.msra.gmra.mxu0 %vm363_vm2, %v690_v47 }
 0x591   : > { %1549 = vmatpush3.xpose.msk.msra.mxu0 %vm363_vm2, %v847_v46  ;;  %1550 = vmatprep.mubr.msk.f32.mxu0 %vm1832_vm0, %v1831_v0 }
 0x592   : > { %1558 = vmatprep.subr.mxu0 %v1831_v0 }
 0x594   : > { %1551 = vmatmul.mubr.msk.f32.vlgmr.msra.gmra.mxu0 %vm363_vm2, %v845_v48 }
 0x595   : > { %1560 = vmatprep.mubr.msk.f32.mxu0 %vm1832_vm0, %v1831_v0  ;;  %1559 = vmatpush3.msra.mxu0 %v1010_v9 }
 0x596   : > { %1568 = vmatprep.subr.mxu0 %v1831_v0 }
 0x650   : > { %v763_v50 = vpop.f32.mrf.mxu0 }
 0x651   : > { %1546 = vmatmul.mubr.msk.f32.vlgmr.msra.gmra.mxu1 %vm363_vm2, %v763_v50 }
 0x652   : > { %v1542_v51 = vpop.f32.mrf.mxu0  ;;  %1555 = vmatprep.mubr.msk.f32.mxu1 %vm1832_vm0, %v1831_v0 }
 0x654   : > { %v918_v52 = vpop.f32.mrf.mxu0 }
 0x655   : > { %v922_v53 = vsel %vm359_vm3, %v918_v52, -1e+12 }
 0x656   : > { %v1552_v54 = vpop.f32.mrf.mxu0  ;;  %v923_v55 = vsel %vm363_vm2, %v922_v53, -inf }
 0x657   : > { %924 = vmax.xlane.f32.xlu1 %v923_v55 }
 0x668   : > { %934 = vrot.lane.b32.xlu1 %v2023_v8, %s1840_s28  ;;  %s1844_s28 = smov [#allocation9]  }
 0x669   : > { %s1760_s22 = sshll.u32 %s1844_s28, 4  ;;  %s1761_s22 = int_to_ptr.vmem [resolvable:$false] %s1760_s22 }
 0x66a   : > { %s1762_s14 = scalar_lea.vmem %s1761_s22, 256  ;;  %p1763_p6 = scmp.lt.s32.totalorder %s1355_s10, %s1761_s22 }
 0x66b   : > { %p1764_p12 = scmp.lt.s32.totalorder %s1762_s14, %s1756_s6 }
 0x66c   : > { %1089 = vrot.lane.b32.xlu1 %v2023_v8, %s1841_s7 }
 0x66d   : > { %p1765_p7 = por %p1764_p12, %p1763_p6 }
 0x66f   : > { %p1766_p9 = pnand %p1765_p7, %p1759_p2 }
 0x670   : > { %1087 = vrot.lane.b32.xlu1 %v2023_v8, %s1842_s9 }
 0x6e0   : > { %v925_v56 = vpop.xlane.xlu1 %924 }
 0x6e1   : > { %v926_v57 = vsub.f32 %v922_v53, %v925_v56 }
 0x6e3   : > { %v927_v58 = vmul.f32 1.442695, %v926_v57 }
 0x6e4   : > { %v935_v59 = vpop.permute.xlu1 %934 }
 0x6e5   : > { %1668 = vpow2.f32 %v927_v58  ;;  %1554 = vmatpush3.msra.mxu1 %v935_v59 }
 0x6e6   : > { %1563 = vmatprep.subr.mxu1 %v1831_v0 }
 0x6e8   : > { %v1090_v5 = vpop.permute.xlu1 %1089 }
 0x6ec   : > { %v1088_v7 = vpop.permute.xlu1 %1087 }
 0x6f2   : > { %v1669_v60 = vpop.eup %1668 }
 0x6f3   : > { %v929_v61 = vsel %vm363_vm2, %v1669_v60, 0.0 }
 0x6f4   : > { %930 = vadd.xlane.f32.xlu0 %v929_v61 }
 0x711   : > { %v837_v62 = vpop.f32.mrf.mxu1 }
 0x712   : > { %v842_v1 = vadd.f32 %v841_v63, %v837_v62 }
 0x713   : > { %v1547_v2 = vpop.f32.mrf.mxu1 }
 0x714   : > { %843 = vst.msk [vmem:[#allocation2] sm:$0xff] %vm281_vm1, %v842_v1 }
 0x71b   : > { %v1084_v13 = vld [vmem:[#allocation2] sm:$0xff] }
 0x77d   : > { %v931_v3 = vpop.xlane.xlu0 %930 }
 0x77e   : > { %1670 = vrcp.f32 %v931_v3 }
 0x78b   : > { %v1671_v4 = vpop.eup %1670 }
 0x78c   : > { %v933_v6 = vmul.f32 %v1671_v4, %v1669_v60 }
 0x78e   : > { %1556 = vmatmul.mubr.msk.f32.vlgmr.msra.gmra.mxu1 %vm363_vm2, %v933_v6 }
 0x78f   : > { %1564 = vmatpush3.xpose.msk.msra.mxu1 %vm363_vm2, %v1090_v5  ;;  %1565 = vmatprep.mubr.msk.f32.mxu1 %vm1832_vm0, %v1831_v0 }
 0x790   : > { %1573 = vmatprep.subr.mxu1 %v1831_v0 }
 0x792   : > { %1566 = vmatmul.mubr.msk.f32.vlgmr.msra.gmra.mxu1 %vm363_vm2, %v1088_v7 }
 0x793   : > { %1575 = vmatprep.mubr.msk.f32.mxu1 %vm1832_vm0, %v1831_v0 }
 0x84e   : > { %v1006_v10 = vpop.f32.mrf.mxu1 }
 0x84f   : > { %1561 = vmatmul.mubr.msk.f32.vlgmr.msra.gmra.mxu0 %vm363_vm2, %v1006_v10 }
 0x850   : > { %v1557_v11 = vpop.f32.mrf.mxu1  ;;  %1570 = vmatprep.mubr.msk.f32.mxu0 %vm1832_vm0, %v1831_v0  ;;  %v1253_v0 = vld [vmem:[#allocation8 + $0x18] sm:$0xff] }
 0x851   : > { %1574 = vmatpush3.msra.mxu1 %v1253_v0 }
 0x852   : > { %v1161_v12 = vpop.f32.mrf.mxu1 }
 0x853   : > { %v1165_v15 = vsel %vm359_vm3, %v1161_v12, -1e+12 }
 0x854   : > { %v1567_v16 = vpop.f32.mrf.mxu1  ;;  %v1166_v17 = vsel %vm363_vm2, %v1165_v15, -inf }
 0x855   : > { %1167 = vmax.xlane.f32.xlu1 %v1166_v17 }
 0x8de   : > { %v1168_v18 = vpop.xlane.xlu1 %1167 }
 0x8df   : > { %v1169_v19 = vsub.f32 %v1165_v15, %v1168_v18 }
 0x8e1   : > { %v1170_v20 = vmul.f32 1.442695, %v1169_v19 }
 0x8e3   : > { %1672 = vpow2.f32 %v1170_v20 }
 0x8f0   : > { %v1673_v21 = vpop.eup %1672 }
 0x8f1   : > { %v1172_v22 = vsel %vm363_vm2, %v1673_v21, 0.0 }
 0x8f2   : > { %1173 = vadd.xlane.f32.xlu0 %v1172_v22 }
 0x908   : > { %1177 = vrot.lane.b32.xlu0 %v2023_v8, %s1843_s16 }
 0x90f   : > { %v1080_v23 = vpop.f32.mrf.mxu0 }
 0x910   : > { %v1085_v14 = vadd.f32 %v1084_v13, %v1080_v23 }
 0x911   : > { %v1562_v24 = vpop.f32.mrf.mxu0 }
 0x912   : > { %1086 = vst.msk [vmem:[#allocation2] sm:$0xff] %vm281_vm1, %v1085_v14 }
 0x919   : > { %v1327_v31 = vld [vmem:[#allocation2] sm:$0xff] }
 0x97b   : > { %v1174_v25 = vpop.xlane.xlu0 %1173 }
 0x97c   : > { %1674 = vrcp.f32 %v1174_v25 }
 0x97f   : > { %v1178_v26 = vpop.permute.xlu0 %1177 }
 0x980   : > { %1569 = vmatpush3.msra.mxu0 %v1178_v26 }
 0x989   : > { %v1675_v27 = vpop.eup %1674 }
 0x98a   : > { %v1176_v28 = vmul.f32 %v1675_v27, %v1673_v21 }
 0x98c   : > { %1571 = vmatmul.mubr.msk.f32.vlgmr.msra.gmra.mxu0 %vm363_vm2, %v1176_v28 }
 0xa4c   : > { %v1249_v29 = vpop.f32.mrf.mxu0 }
 0xa4d   : > { %1576 = vmatmul.mubr.msk.f32.vlgmr.msra.gmra.mxu1 %vm363_vm2, %v1249_v29 }
 0xa4e   : > { %v1572_v8 = vpop.f32.mrf.mxu0 }
 0xb0d   : > { %v1323_v30 = vpop.f32.mrf.mxu1 }
 0xb0e   : > { %v1328_v32 = vadd.f32 %v1327_v31, %v1323_v30 }
 0xb0f   : > { %v1577_v33 = vpop.f32.mrf.mxu1 }
 0xb10   : > { %1329 = vst.msk [vmem:[#allocation2] sm:$0xff] %vm281_vm1, %v1328_v32 }
 0xb17   : > { %v1330_v35 = vld [vmem:[#allocation2] sm:$0xff] }
 0xb18   : > { %v1338_v36 = vadd.f32 %v1473_v34, %v1330_v35 }
 0xb1a   : > { %1339 = vst.msk [vmem:[%s268_s8] sm:$0xff] %vm281_vm1, %v1338_v36 }
 0xb1b   : > { %1769 = shalt.err (!%p1766_p9)
}
 0xb1c   : > { %s1770_s7 = scalar_lea.hbm %s1352_s30, 128  ;;  %s1774_s16 = scalar_lea.hbm %s2159_s5, 256 }
 0xb1d   : > { %p1771_p13 = scmp.ne.s32.totalorder %s1352_s30, %s1770_s7  ;;  %p1775_p4 = scmp.lt.s32.totalorder %s1352_s30, %s2159_s5 }
 0xb1e   : > { %p1776_p8 = scmp.lt.s32.totalorder %s1774_s16, %s1770_s7 }
 0xb1f   : > { %p1772_p5 = pnand %p1771_p13, %p2175_p0 }
 0xb20   : > { %p1777_p3 = por %p1776_p8, %p1775_p4 }
 0xb21   : > { %p1773_p10 = pneg %p1772_p5 }
 0xb23   : > { %p1778_p11 = pnand %p1777_p3, %p1773_p10 }
 0xb25   : > { %1781 = shalt.err (!%p1778_p11)
}
 0xb26   : > { %1588 = dma.vmem_to_hbm [thread:$0]  (%p2175_p0), %s1355_s10, 128, %s1352_s30, %s1341_s29  }
 0xb27 PF: > { %s1366_s26 = sand.u32 1, %s1812_s18   ;;  %p2176_p1 = scmp.ne.s32.totalorder %s2165_s25, 0 }
 0xb28   : > { %p2177_p2 = scmp.ge.s32.totalorder %s1824_s21, 2  ;;  %s1367_s8 = scalar_lea.sflag [#allocation5], %s1366_s26 }
 0xb2a   : > { %p1602_p6 = pnand %p2177_p2, %p2176_p1 }
 0xb2c   : > { %p1603_p12 = pneg %p1602_p6 }
 0xb2e   : > { %1807 = dma.done.wait (%p1603_p12), %s1367_s8, 128  }
 0xb2f   : > { %1809 = vsyncadd (%p1603_p12), %s1367_s8, 4294967168  ;;  %p19_p7 = scmp.ge.s32.totalorder %s1947_s15, 4   ;;  %s2178_s18 = smov %s1816_s19 }
 0xb30   : > { %s2179_s19 = smov %s1820_s20  ;;  %s2180_s20 = smov %s1963_s27 }
 0xb31   : > { %s2181_s21 = smov %s1947_s15  ;;  %21 = sbr.rel (!%p19_p7) target bundleno = 6 (0x6), region = 93 }
 0xb36   :  { %1372 = vsyncpa [#allocation4], 1 }
 0xb37   :  { %1374 = vsyncpa [#allocation4 + $0x1], 1 }
 0xb38   :  { %1375 = vsyncpa [#allocation7], 1 }
 0xb39   :  { %1376 = vsyncpa [#allocation5], 1 }
 0xb3a   :  { %1378 = vsyncpa [#allocation5 + $0x1], 1 }

</bundles_post_ra>
